<compile_context>
chip_gen: v6e
topology: v6e:2x2x1
jax: 0.10.0
libtpu: 0.0.40
codegen_flags: <defaults>
</compile_context>

<pallas_src>
import functools
import math

import jax
import jax.numpy as jnp
import numpy as np
from jax.experimental import pallas as pl
from jax.experimental.pallas import tpu as pltpu


def _attention_block_kernel(x_ref, w_ref, b_ref, o_ref, qkv_ref, acc_ref, *,
                            key_size, value_size, key_tile):
    """One (batch, key-tile) grid step.

    x_ref:   (1, S, C)        input tile
    w_ref:   (C, 2K+V) bf16   fused [Wq^T/sqrt(K) | Wk^T | Wv^T], VMEM-resident
    b_ref:   (1, 2K+V) f32    fused [bq/sqrt(K) | bk | bv], VMEM-resident
    o_ref:   (1, S, C+V)      output = concat([input, probs @ V], -1)
    qkv_ref: (S, 2K+V) f32    scratch: fused projection, computed once per batch elem
    acc_ref: (S, V)    f32    scratch: self-attention output accumulated over key tiles
    """
    t = pl.program_id(1)
    K, V, Tk = key_size, value_size, key_tile
    C = x_ref.shape[2]

    # --- once per batch element: fused QKV projection + accumulator init --------
    @pl.when(t == 0)
    def _():
        x_bf = x_ref[0].astype(jnp.bfloat16)                        # (S, C)
        qkv_ref[...] = (
            jnp.dot(x_bf, w_ref[...], preferred_element_type=jnp.float32)
            + b_ref[...])                                           # (S, 2K+V) f32
        acc_ref[...] = jnp.zeros_like(acc_ref)

    # --- per key tile ------------------------------------------------------------
    start = pl.multiple_of(t * Tk, Tk)
    q = qkv_ref[:, :K].astype(jnp.bfloat16)                         # (S, K), pre-scaled 1/sqrt(K)
    kv_t = qkv_ref[pl.ds(start, Tk), K:]                            # (Tk, K+V) f32
    k_t = kv_t[:, :K].astype(jnp.bfloat16)                          # (Tk, K)
    v_t = kv_t[:, K:].astype(jnp.bfloat16)                          # (Tk, V)

    # scores[i, j] = <q_i, k_j> / sqrt(K)   (scale folded into q's weight columns)
    s = jax.lax.dot_general(q, k_t, (((1,), (1,)), ((), ())),
                            preferred_element_type=jnp.float32)     # (S, Tk)

    # NOTE: the reference adds (1-mask)*-1e6 here; it is constant along the softmax
    # axis (queries) and cancels exactly, so it is omitted (see module docstring).
    # Softmax over the *query* axis (torch dim=1): each key column is independent,
    # so key tiles need no online-softmax carry, only accumulation of probs @ V.
    mx = jnp.max(s, axis=0, keepdims=True)                          # (1, Tk)
    e = jnp.exp(s - mx)                                             # (S, Tk)
    recip = pl.reciprocal(jnp.sum(e, axis=0, keepdims=True), approx=True)
    p = (e * recip).astype(jnp.bfloat16)                            # (S, Tk)
    # TODO(synk): when S >> V it is cheaper to scale v_t rows by recip instead of p.
    acc_ref[...] += jnp.dot(p, v_t, preferred_element_type=jnp.float32)

    # --- last key tile: emit concat([input, self_out]) as two lane-dense stores ---
    @pl.when(t == pl.num_programs(1) - 1)
    def _():
        o_ref[0, :, :C] = x_ref[0]                                  # passthrough, no cast
        o_ref[0, :, C:] = acc_ref[...].astype(o_ref.dtype)


def _largest_divisor_at_most(n, cap):
    d = min(n, cap)
    while n % d:
        d -= 1
    return d


def attention_block(x, attention_mask, wq, bq, wk, bk, wv, bv, *, key_tile=512):
    """Forward of AttentionBlock. x: (B, S, C); attention_mask: (B, S).
    wq/wk: (key_size, C), wv: (value_size, C); 1-D biases (torch nn.Linear layout).
    Returns (B, S, C + value_size) with the dtype of x.

    `attention_mask` is accepted for interface parity but unused: the softmax is
    over the query axis, so the column-constant (1-mask)*-1e6 offset of the
    reference cancels exactly (proved in float64 in the self-test below)."""
    B, S, C = x.shape
    K = wq.shape[0]
    V = wv.shape[0]
    del attention_mask  # exact mathematical no-op for this module (see docstring)

    inv_sqrt_key = 1.0 / math.sqrt(K)
    f32 = jnp.float32
    # Fused, pre-transposed projection weight; 1/sqrt(K) folded into the Q columns;
    # shipped as bf16 (single MXU pass, half the weight DMA).
    w_fused = jnp.concatenate(
        [wq.T.astype(f32) * inv_sqrt_key, wk.T.astype(f32), wv.T.astype(f32)],
        axis=1).astype(jnp.bfloat16)                                # (C, 2K+V)
    b_fused = jnp.concatenate(
        [bq.astype(f32) * inv_sqrt_key, bk.astype(f32), bv.astype(f32)]
    ).reshape(1, 2 * K + V)                                         # (1, 2K+V) f32

    # Key-tile size bounds live score state to (S, Tk) (v7x has only 64 MiB VMEM).
    Tk = _largest_divisor_at_most(S, key_tile)

    kernel = functools.partial(_attention_block_kernel,
                               key_size=K, value_size=V, key_tile=Tk)

    return pl.pallas_call(
        kernel,
        out_shape=jax.ShapeDtypeStruct((B, S, C + V), x.dtype),
        grid_spec=pltpu.PrefetchScalarGridSpec(
            num_scalar_prefetch=0,
            grid=(B, S // Tk),
            in_specs=[
                pl.BlockSpec((1, S, C), lambda b, t: (b, 0, 0)),      # input tile
                pl.BlockSpec((C, 2 * K + V), lambda b, t: (0, 0)),    # fused Wqkv (resident)
                pl.BlockSpec((1, 2 * K + V), lambda b, t: (0, 0)),    # fused bias (resident)
            ],
            out_specs=pl.BlockSpec((1, S, C + V), lambda b, t: (b, 0, 0)),
            scratch_shapes=[
                pltpu.VMEM((S, 2 * K + V), jnp.float32),              # fused QKV projection
                pltpu.VMEM((S, V), jnp.float32),                      # self-attn accumulator
            ],
        ),
        compiler_params=pltpu.CompilerParams(
            # Batch is independent (shards across v7x's two TensorCores); the key
            # tile axis carries the accumulator -> "arbitrary".
            dimension_semantics=("parallel", "arbitrary"),
            # Default scoped VMEM is ample at these block sizes; raise per
            # generation (e.g. ~96 MiB on v5e/v6e, <=48 MiB on v7x) for long S.
        ),
    )(x, w_fused, b_fused)


def attention_block_ref_np(x, attention_mask, wq, bq, wk, bk, wv, bv,
                           dtype=np.float64):
    """Faithful, op-for-op NumPy port of the PyTorch forward (incl. the mask add)."""
    x = np.asarray(x, dtype)
    mask = np.asarray(attention_mask, dtype)
    wq, bq = np.asarray(wq, dtype), np.asarray(bq, dtype)
    wk, bk = np.asarray(wk, dtype), np.asarray(bk, dtype)
    wv, bv = np.asarray(wv, dtype), np.asarray(bv, dtype)
    ext = (1.0 - mask)[:, None, :] * -1000000.0
    q = x @ wq.T + bq
    k = x @ wk.T + bk
    v = x @ wv.T + bv
    scores = (q @ np.swapaxes(k, 1, 2) + ext) / math.sqrt(wq.shape[0])
    scores = scores - scores.max(axis=1, keepdims=True)   # stable softmax over dim=1
    e = np.exp(scores)
    probs = e / e.sum(axis=1, keepdims=True)
    return np.concatenate([x, probs @ v], axis=2)


if __name__ == "__main__":
    key = jax.random.PRNGKey(0)
    batch, seq = 2, 8
    in_channels, key_size, value_size = 128, 128, 128     # lane-aligned channel dims

    ks = jax.random.split(key, 7)
    x = jax.random.normal(ks[0], (batch, seq, in_channels), dtype=jnp.float32)
    wq = 0.1 * jax.random.normal(ks[1], (key_size, in_channels), dtype=jnp.float32)
    bq = 0.1 * jax.random.normal(ks[2], (key_size,), dtype=jnp.float32)
    wk = 0.1 * jax.random.normal(ks[3], (key_size, in_channels), dtype=jnp.float32)
    bk = 0.1 * jax.random.normal(ks[4], (key_size,), dtype=jnp.float32)
    wv = 0.1 * jax.random.normal(ks[5], (value_size, in_channels), dtype=jnp.float32)
    bv = 0.1 * jax.random.normal(ks[6], (value_size,), dtype=jnp.float32)

    # 1 = attend, 0 = masked; mask the last two keys of batch element 1.
    attention_mask = jnp.ones((batch, seq), dtype=jnp.float32).at[1, -2:].set(0.0)

    # float64 ground truth: faithful op order including the mask add (in f64 the
    # -1e6 offset is numerically harmless).
    args_np = [np.asarray(a) for a in (x, attention_mask, wq, bq, wk, bk, wv, bv)]
    ref64 = attention_block_ref_np(*args_np)

    # Prove the mask term is an exact no-op for this module (query-axis softmax),
    # which justifies the kernel dropping it.
    ref64_nomask = attention_block_ref_np(
        args_np[0], np.ones_like(args_np[1]), *args_np[2:])
    mask_noop_err = np.max(np.abs(ref64 - ref64_nomask))
    assert mask_noop_err < 1e-8, f"mask no-op identity failed: {mask_noop_err}"

    out = attention_block(x, attention_mask, wq, bq, wk, bk, wv, bv)
    out = np.asarray(jax.block_until_ready(out))

    assert out.shape == (batch, seq, in_channels + value_size), out.shape
    assert out.dtype == np.float32, out.dtype

    # Passthrough half must be an exact copy of the input (no arithmetic touches it).
    pass_err = np.max(np.abs(out[..., :in_channels] - args_np[0]))
    assert pass_err < 1e-6, f"passthrough half not copied exactly: {pass_err}"

    # Attention half: bf16 MXU operands with f32 accumulation give ~0.5% relative
    # error on these O(1) activations; bound vs the exact float64 reference.
    attn_err = np.max(np.abs(out[..., in_channels:] - ref64[..., in_channels:]))
    assert attn_err < 5e-2, f"mismatch vs float64 reference: max abs err {attn_err}"

    print("KERNEL_OK")
</pallas_src>

<mosaic_0001>
module attributes {stable_mosaic.version = 11 : i64} {
  func.func @_attention_block_kernel(%arg0: i32, %arg1: i32, %arg2: memref<1x8x128xf32, #tpu.memory_space<vmem>>, %arg3: memref<128x384xbf16, #tpu.memory_space<vmem>>, %arg4: memref<1x384xf32, #tpu.memory_space<vmem>>, %arg5: memref<1x8x256xf32, #tpu.memory_space<vmem>>, %arg6: memref<8x384xf32, #tpu.memory_space<vmem>>, %arg7: memref<8x128xf32, #tpu.memory_space<vmem>>) attributes {dimension_semantics = [#tpu.dimension_semantics<parallel>, #tpu.dimension_semantics<arbitrary>], iteration_bounds = array<i64: 2, 1>, scalar_prefetch = 0 : i64, scratch_operands = 2 : i64, tpu.core_type = #tpu.core_type<tc>, window_params = [{transform_indices = @transform_0, window_bounds = array<i64: 1, 8, 128>}, {pipeline_mode = #tpu.pipeline_mode<synchronous>, transform_indices = @transform_1, window_bounds = array<i64: 128, 384>}, {pipeline_mode = #tpu.pipeline_mode<synchronous>, transform_indices = @transform_2, window_bounds = array<i64: 1, 384>}, {transform_indices = @transform_3, window_bounds = array<i64: 1, 8, 256>}]} {
    %c0_i32 = arith.constant 0 : i32
    %0 = arith.cmpi eq, %arg1, %c0_i32 : i32
    %1 = arith.extui %0 : i1 to i32
    %c0_i32_0 = arith.constant 0 : i32
    %2 = arith.cmpi ne, %1, %c0_i32_0 : i32
    scf.if %2 {
      %c0_11 = arith.constant 0 : index
      %c0_12 = arith.constant 0 : index
      %c0_13 = arith.constant 0 : index
      %32 = vector.load %arg2[%c0_11, %c0_12, %c0_13] : memref<1x8x128xf32, #tpu.memory_space<vmem>>, vector<1x8x128xf32>
      %33 = vector.shape_cast %32 : vector<1x8x128xf32> to vector<8x128xf32>
      %34 = arith.truncf %33 : vector<8x128xf32> to vector<8x128xbf16>
      %c0_14 = arith.constant 0 : index
      %c0_15 = arith.constant 0 : index
      %35 = vector.load %arg3[%c0_14, %c0_15] : memref<128x384xbf16, #tpu.memory_space<vmem>>, vector<128x384xbf16>
      %cst_16 = arith.constant dense<0.000000e+00> : vector<8x384xf32>
      %36 = tpu.matmul %34, %35, %cst_16 {dimension_numbers = #tpu.dot_dimension_numbers<[1], [0], [0], [1], [0, 0, 1, 1], [], []>} : vector<8x128xbf16>, vector<128x384xbf16>, vector<8x384xf32> -> vector<8x384xf32>
      %c0_17 = arith.constant 0 : index
      %c0_18 = arith.constant 0 : index
      %37 = vector.load %arg4[%c0_17, %c0_18] : memref<1x384xf32, #tpu.memory_space<vmem>>, vector<1x384xf32>
      %38 = vector.broadcast %37 : vector<1x384xf32> to vector<8x384xf32>
      %39 = arith.addf %36, %38 : vector<8x384xf32>
      %c0_19 = arith.constant 0 : index
      %c0_20 = arith.constant 0 : index
      %40 = vector.load %arg6[%c0_19, %c0_20] : memref<8x384xf32, #tpu.memory_space<vmem>>, vector<8x384xf32>
      tpu.vector_store %arg6[%c0_19, %c0_20], %39 {strides = array<i32>} : memref<8x384xf32, #tpu.memory_space<vmem>>, vector<8x384xf32>,
      %cst_21 = arith.constant 0.000000e+00 : f32
      %41 = vector.broadcast %cst_21 : f32 to vector<8x128xf32>
      %c0_22 = arith.constant 0 : index
      %c0_23 = arith.constant 0 : index
      %42 = vector.load %arg7[%c0_22, %c0_23] : memref<8x128xf32, #tpu.memory_space<vmem>>, vector<8x128xf32>
      tpu.vector_store %arg7[%c0_22, %c0_23], %41 {strides = array<i32>} : memref<8x128xf32, #tpu.memory_space<vmem>>, vector<8x128xf32>,
    } else {
    }
    %c8_i32 = arith.constant 8 : i32
    %3 = arith.muli %arg1, %c8_i32 : i32
    %4 = tpu.assume_multiple %3, 8 : i32
    %c0 = arith.constant 0 : index
    %c0_1 = arith.constant 0 : index
    %5 = vector.load %arg6[%c0, %c0_1] : memref<8x384xf32, #tpu.memory_space<vmem>>, vector<8x128xf32>
    %6 = arith.truncf %5 : vector<8x128xf32> to vector<8x128xbf16>
    %7 = arith.index_cast %4 : i32 to index
    %c128 = arith.constant 128 : index
    %8 = vector.load %arg6[%7, %c128] : memref<8x384xf32, #tpu.memory_space<vmem>>, vector<8x256xf32>
    %9 = vector.extract_strided_slice %8 {offsets = [0, 0], sizes = [8, 128], strides = [1, 1]} : vector<8x256xf32> to vector<8x128xf32>
    %10 = arith.truncf %9 : vector<8x128xf32> to vector<8x128xbf16>
    %11 = vector.extract_strided_slice %8 {offsets = [0, 128], sizes = [8, 128], strides = [1, 1]} : vector<8x256xf32> to vector<8x128xf32>
    %12 = arith.truncf %11 : vector<8x128xf32> to vector<8x128xbf16>
    %cst = arith.constant dense<0.000000e+00> : vector<8x8xf32>
    %13 = tpu.matmul %6, %10, %cst {dimension_numbers = #tpu.dot_dimension_numbers<[1], [1], [0], [0], [0, 0, 1, 0], [], []>} : vector<8x128xbf16>, vector<8x128xbf16>, vector<8x8xf32> -> vector<8x8xf32>
    %cst_2 = arith.constant dense<0xFF800000> : vector<8xf32>
    %14 = vector.multi_reduction <maximumf>, %13, %cst_2 [0] : vector<8x8xf32> to vector<8xf32>
    %15 = vector.shape_cast %14 : vector<8xf32> to vector<1x8xf32>
    %16 = vector.broadcast %15 : vector<1x8xf32> to vector<8x8xf32>
    %17 = arith.subf %13, %16 : vector<8x8xf32>
    %18 = math.exp %17 : vector<8x8xf32>
    %cst_3 = arith.constant dense<0.000000e+00> : vector<8xf32>
    %19 = vector.multi_reduction <add>, %18, %cst_3 [0] : vector<8x8xf32> to vector<8xf32>
    %20 = vector.shape_cast %19 : vector<8xf32> to vector<1x8xf32>
    %21 = tpu.reciprocal %20 {approx = true} : vector<1x8xf32> -> vector<1x8xf32>
    %22 = vector.broadcast %21 : vector<1x8xf32> to vector<8x8xf32>
    %23 = arith.mulf %18, %22 : vector<8x8xf32>
    %24 = arith.truncf %23 : vector<8x8xf32> to vector<8x8xbf16>
    %c0_4 = arith.constant 0 : index
    %c0_5 = arith.constant 0 : index
    %25 = vector.load %arg7[%c0_4, %c0_5] : memref<8x128xf32, #tpu.memory_space<vmem>>, vector<8x128xf32>
    %cst_6 = arith.constant dense<0.000000e+00> : vector<8x128xf32>
    %26 = tpu.matmul %24, %12, %cst_6 {dimension_numbers = #tpu.dot_dimension_numbers<[1], [0], [0], [1], [0, 0, 1, 1], [], []>} : vector<8x8xbf16>, vector<8x128xbf16>, vector<8x128xf32> -> vector<8x128xf32>
    %27 = arith.addf %25, %26 : vector<8x128xf32>
    %c0_7 = arith.constant 0 : index
    %c0_8 = arith.constant 0 : index
    %28 = vector.load %arg7[%c0_7, %c0_8] : memref<8x128xf32, #tpu.memory_space<vmem>>, vector<8x128xf32>
    tpu.vector_store %arg7[%c0_7, %c0_8], %27 {strides = array<i32>} : memref<8x128xf32, #tpu.memory_space<vmem>>, vector<8x128xf32>,
    %c0_i32_9 = arith.constant 0 : i32
    %29 = arith.cmpi eq, %arg1, %c0_i32_9 : i32
    %30 = arith.extui %29 : i1 to i32
    %c0_i32_10 = arith.constant 0 : i32
    %31 = arith.cmpi ne, %30, %c0_i32_10 : i32
    scf.if %31 {
      %c0_11 = arith.constant 0 : index
      %c0_12 = arith.constant 0 : index
      %c0_13 = arith.constant 0 : index
      %32 = vector.load %arg2[%c0_11, %c0_12, %c0_13] : memref<1x8x128xf32, #tpu.memory_space<vmem>>, vector<1x8x128xf32>
      %33 = vector.shape_cast %32 : vector<1x8x128xf32> to vector<8x128xf32>
      %c0_14 = arith.constant 0 : index
      %c0_15 = arith.constant 0 : index
      %c0_16 = arith.constant 0 : index
      %34 = vector.load %arg5[%c0_14, %c0_15, %c0_16] : memref<1x8x256xf32, #tpu.memory_space<vmem>>, vector<1x8x128xf32>
      %35 = vector.shape_cast %34 : vector<1x8x128xf32> to vector<8x128xf32>
      %36 = vector.shape_cast %33 : vector<8x128xf32> to vector<1x8x128xf32>
      tpu.vector_store %arg5[%c0_14, %c0_15, %c0_16], %36 {strides = array<i32>} : memref<1x8x256xf32, #tpu.memory_space<vmem>>, vector<1x8x128xf32>,
      %c0_17 = arith.constant 0 : index
      %c0_18 = arith.constant 0 : index
      %37 = vector.load %arg7[%c0_17, %c0_18] : memref<8x128xf32, #tpu.memory_space<vmem>>, vector<8x128xf32>
      %c0_19 = arith.constant 0 : index
      %c0_20 = arith.constant 0 : index
      %c128_21 = arith.constant 128 : index
      %38 = vector.load %arg5[%c0_19, %c0_20, %c128_21] : memref<1x8x256xf32, #tpu.memory_space<vmem>>, vector<1x8x128xf32>
      %39 = vector.shape_cast %38 : vector<1x8x128xf32> to vector<8x128xf32>
      %40 = vector.shape_cast %37 : vector<8x128xf32> to vector<1x8x128xf32>
      tpu.vector_store %arg5[%c0_19, %c0_20, %c128_21], %40 {strides = array<i32>} : memref<1x8x256xf32, #tpu.memory_space<vmem>>, vector<1x8x128xf32>,
    } else {
    }
    return
  }
  func.func @transform_0(%arg0: i32, %arg1: i32) -> (i32, i32, i32) {
    %c0_i32 = arith.constant 0 : i32
    %c0_i32_0 = arith.constant 0 : i32
    %c0_i32_1 = arith.constant 0 : i32
    return %arg0, %c0_i32, %c0_i32_0 : i32, i32, i32
  }
  func.func @transform_1(%arg0: i32, %arg1: i32) -> (i32, i32) {
    %c0_i32 = arith.constant 0 : i32
    %c0_i32_0 = arith.constant 0 : i32
    %c0_i32_1 = arith.constant 0 : i32
    return %c0_i32, %c0_i32_0 : i32, i32
  }
  func.func @transform_2(%arg0: i32, %arg1: i32) -> (i32, i32) {
    %c0_i32 = arith.constant 0 : i32
    %c0_i32_0 = arith.constant 0 : i32
    %c0_i32_1 = arith.constant 0 : i32
    return %c0_i32, %c0_i32_0 : i32, i32
  }
  func.func @transform_3(%arg0: i32, %arg1: i32) -> (i32, i32, i32) {
    %c0_i32 = arith.constant 0 : i32
    %c0_i32_0 = arith.constant 0 : i32
    %c0_i32_1 = arith.constant 0 : i32
    return %arg0, %c0_i32, %c0_i32_0 : i32, i32, i32
  }
}

</mosaic_0001>

<bundles_post_ra>
// kernel: tpu_custom_call.1
= control target key start
LH: loop header
LB: loop body
LE: loop exit
PB: predicated region body
PF: predicated region fallthrough
CT: control target
= control target key end

     0   :  { %8 = vsyncpa [#allocation5], 0  ;;  %s1288_s0 = inlined_call_operand.hbm [shape: f32[2,8,128], index: 0, kind: input, shape index: {}]   ;;  %s1289_s1 = inlined_call_operand.hbm [shape: bf16[128,384], index: 1, kind: input, shape index: {}]   ;;  %s1290_s2 = inlined_call_operand.vmem [shape: f32[1,384], index: 2, kind: input, shape index: {}]   ;;  %s1291_s3 = inlined_call_operand.hbm [shape: f32[2,8,256], index: 3, kind: output, shape index: {}]  }
   0x1   :  { %10 = vsyncpa [#allocation5 + $0x1], 0 }
   0x2   :  { %11 = vsyncpa [#allocation8], 0 }
   0x3   :  { %12 = vsyncpa [#allocation6], 0 }
   0x4   :  { %14 = vsyncpa [#allocation6 + $0x1], 0  ;;  %s1086_s12 = smov 0   ;;  %s1088_s13 = smov 0  }
   0x5   :  { %s1090_s14 = smov 0   ;;  %s1092_s15 = smov 0  }
   0x6   :  { %s1094_s16 = smov 0   ;;  %s1096_s17 = smov 0  }
   0x7 LB: > { %s717_s18 = sadd.s32 4294967295, %s1056_s17   ;;  %s718_s19 = sadd.s32 4294967294, %s1056_s17   ;;  %s1056_s17 = sphi %s1096_s17, %s20_s17   ;;  %s1052_s16 = sphi %s1094_s16, %s1309_s16   ;;  %s1048_s15 = sphi %s1092_s15, %s1308_s15   ;;  %s1044_s14 = sphi %s1090_s14, %s1307_s14   ;;  %s1040_s13 = sphi %s1088_s13, %s1306_s13   ;;  %s1036_s12 = sphi %s1086_s12, %s1305_s12  }
   0x8   : > { %p52_p0 = scmp.ne.s32.totalorder %s1040_s13, %s1036_s12  ;;  %p1120_p1 = scmp.eq.s32.totalorder %s717_s18, 0 }
   0x9   : > { %p1124_p2 = scmp.eq.s32.totalorder %s717_s18, 1  ;;  %p124_p3 = scmp.eq.s32.totalorder %s718_s19, 1 }
   0xa   : > { %p1130_p4 = por %p1120_p1, %p52_p0  ;;  %p719_p5 = scmp.ge.s32.totalorder %s1056_s17, 1 }
   0xb   : > { %p1135_p6 = por %p124_p3, %p52_p0  ;;  %p131_p7 = scmp.lt.s32.totalorder %s1056_s17, 3 }
   0xc   : > { %s1295_s22 = scalar_select %p1130_p4, 1, 0 }
   0xd   : > { %s1296_s23 = scalar_select %p1135_p6, 1, 0 }
   0xe   : > { %p1140_p8 = pnand %p719_p5, %p131_p7  ;;  %s1058_s25 = smov [#allocation7]  }
   0xf   : > { %s143_s26 = sshll.u32 %s1058_s25, 4  ;;  %s32_s28 = sadd.s32 1, %s1052_s16  ;;  %s144_s26 = int_to_ptr.vmem [resolvable:$true] %s143_s26 }
  0x10   : > { %p812_p9 = pneg %p1140_p8  ;;  %s929_s29 = scalar_lea.vmem %s144_s26, 3072 }
  0x11   : > { %p930_p13 = scmp.ne.s32.totalorder %s144_s26, %s929_s29  ;;  %p937_p5 = scmp.lt.s32.totalorder %s144_s26, %s144_s26 }
  0x12   : > { %p1149_p11 = pnand %p812_p9, %p1120_p1  ;;  %p938_p7 = scmp.lt.s32.totalorder %s929_s29, %s929_s29 }
  0x14   : > { %p920_p12 = pneg %p1149_p11  ;;  %p939_p6 = por %p938_p7, %p937_p5 }
  0x16   : > { %p932_p0 = pnand %p930_p13, %p920_p12 }
  0x18   : > { %p933_p3 = pneg %p932_p0 }
  0x1a   : > { %p940_p4 = pnand %p939_p6, %p933_p3 }
  0x1c   : > { %943 = shalt.err (!%p940_p4)
}
  0x1d   : > { %s1059_s30 = smov 192   ;;  %s1060_s4 = smov 12  }
  0x1e   : > { %815 = dma.hbm_to_vmem [thread:$0]  (!%p1149_p11), %s1289_s1, 3072, %s144_s26, [#allocation8], %s1059_s30, %s1059_s30, %s1060_s4  }
  0x1f   : > { %p34_p6 = scmp.ge.s32.totalorder %s32_s28, 2  ;;  %s39_s7 = sadd.s32 1, %s1044_s14 }
  0x20   : > { %p46_p4 = scmp.ne.s32.totalorder %s1044_s14, %s1040_s13  ;;  %p47_p9 = scmp.eq.s32.totalorder %s1056_s17, 0 }
  0x21   : > { %s1311_s28 = smov (%p34_p6, %s32_s28), 0  ;;  %p825_p0 = scmp.lt.s32.totalorder %s1056_s17, 2 }
  0x22   : > { %p1167_p12 = por %p47_p9, %p46_p4  ;;  %p1173_p13 = por %p1124_p2, %p46_p4 }
  0x23   : > { %s36_s10 = ssub.s32 %s1052_s16, %s1311_s28  ;;  %s160_s11 = sand.u32 1, %s1044_s14  }
  0x24   : > { %p37_p11 = scmp.eq.s32.totalorder %s36_s10, 0  ;;  %s722_s18 = sshll.u32 %s160_s11, 3 }
  0x25   : > { %s723_s25 = sshll.u32 %s1052_s16, 7  ;;  %s164_s30 = scalar_lea.vmem [#allocation4], %s722_s18 }
  0x26   : > { %s1182_s19 = scalar_select %p37_p11, %s1044_s14, %s39_s7  }
  0x27   : > { %s169_s29 = scalar_lea.hbm %s1288_s0, %s723_s25  ;;  %s171_s4 = sshll.u32 %s164_s30, 4  ;;  %s172_s4 = int_to_ptr.vmem [resolvable:$true] %s171_s4 }
  0x28   : > { %p1190_p2 = pnand %p825_p0, %p1167_p12  ;;  %s161_s5 = scalar_lea.sflag [#allocation5], %s160_s11 }
  0x29   : > { %s957_s6 = scalar_lea.vmem %s172_s4, 128  ;;  %s1061_s7 = smov [#allocation4]  }
  0x2a   : > { %p946_p3 = pneg %p1190_p2  ;;  %p958_p5 = scmp.ne.s32.totalorder %s172_s4, %s957_s6 }
  0x2b   : > { %s962_s10 = sshll.u32 %s1061_s7, 4  ;;  %s963_s10 = int_to_ptr.vmem [resolvable:$false] %s962_s10 }
  0x2c   : > { %p960_p7 = pnand %p958_p5, %p946_p3  ;;  %s964_s25 = scalar_lea.vmem %s963_s10, 256 }
  0x2d   : > { %p965_p4 = scmp.lt.s32.totalorder %s172_s4, %s963_s10  ;;  %p966_p9 = scmp.lt.s32.totalorder %s964_s25, %s957_s6 }
  0x2e   : > { %p961_p6 = pneg %p960_p7 }
  0x2f   : > { %p967_p11 = por %p966_p9, %p965_p4 }
  0x31   : > { %p968_p10 = pnand %p967_p11, %p961_p6 }
  0x33   : > { %971 = shalt.err (!%p968_p10)
}
  0x34   : > { %819 = dma.hbm_to_vmem [thread:$0]  (!%p1190_p2), %s169_s29, 128, %s172_s4, %s161_s5  }
  0x35   : > { %180 = sbr.rel (%p1140_p8) target bundleno = 764 (0x2fc), region = 32  ;;  %s1201_s8 = sand.u32 (!%p1140_p8), 1, %s1040_s13  }
  0x36   : > { %s725_s11 = sshll.u32 (!%p1140_p8), %s1201_s8, 3  ;;  %s183_s18 = scalar_lea.sflag (!%p1140_p8), [#allocation5], %s1201_s8 }
  0x37   : > { %s1205_s26 = scalar_lea.vmem (!%p1140_p8), [#allocation4], %s725_s11  ;;  %p1302_p12 = scmp.ne.s32.totalorder (!%p1140_p8), %s1295_s22, 0 }
  0x3a   : > { %1023 = dma.done.wait (%p1302_p12), %s183_s18, 128  }
  0x3b   : > { %1025 = vsyncadd (%p1302_p12), %s183_s18, 4294967168 }
  0x3c   : > { %1027 = dma.done.wait (%p1120_p1), [#allocation8], 3072  }
  0x3d   : > { %1029 = vsyncadd (%p1120_p1), [#allocation8], 4294964224  ;;  %v1062_v0 = vmov 0   ;;  %v882_v1 = vld [vmem:[#allocation7 + $0xac] ss:$12 sps:$4 sm:$0xff]   ;;  %v1063_v19 = vmov 0.0   ;;  %v254_v28 = vlaneseq }
  0x3e   : > { %429 = vmatprep.mubr.bf16.mxu0 %v1062_v0  ;;  %v884_v2 = vld [vmem:[#allocation7 + $0xa8] ss:$12 sps:$4 sm:$0xff]   ;;  %397 = vmatprep.subr.bf16.mxu0 %v882_v1  ;;  %v887_v4 = vld [vmem:[#allocation7 + $0x90] ss:$12 sps:$4 sm:$0xff]   ;;  %v890_v6 = vld [vmem:[#allocation7 + $0x78] ss:$12 sps:$4 sm:$0xff]  }
  0x3f   : > { %v885_v3 = vld [vmem:[#allocation7 + $0x94] ss:$12 sps:$4 sm:$0xff]   ;;  %398 = vmatpush1.bf16.msra.mxu0 %v884_v2  ;;  %v888_v5 = vld [vmem:[#allocation7 + $0x7c] ss:$12 sps:$4 sm:$0xff]   ;;  %v891_v7 = vld [vmem:[#allocation7 + $0x64] ss:$12 sps:$4 sm:$0xff]   ;;  %772 = vmatprep.subr.bf16.mxu1 %v1063_v19 }
  0x40   : > { %399 = vmatprep.subr.bf16.mxu0 %v885_v3  ;;  %v893_v8 = vld [vmem:[#allocation7 + $0x60] ss:$12 sps:$4 sm:$0xff]   ;;  %v896_v10 = vld [vmem:[#allocation7 + $0x48] ss:$12 sps:$4 sm:$0xff]   ;;  %v899_v12 = vld [vmem:[#allocation7 + $0x30] ss:$12 sps:$4 sm:$0xff]  }
  0x41   : > { %v894_v9 = vld [vmem:[#allocation7 + $0x4c] ss:$12 sps:$4 sm:$0xff]   ;;  %v897_v11 = vld [vmem:[#allocation7 + $0x34] ss:$12 sps:$4 sm:$0xff]   ;;  %v900_v13 = vld [vmem:[#allocation7 + $0x1c] ss:$12 sps:$4 sm:$0xff]  }
  0x42   : > { %v902_v14 = vld [vmem:[#allocation7 + $0x18] ss:$12 sps:$4 sm:$0xff]   ;;  %v905_v16 = vld [vmem:[#allocation7] ss:$12 sps:$4 sm:$0xff]   ;;  %vm1064_vm0 = vmmov 0   ;;  %v255_v29 = vshrl.u32 %v254_v28, 7 }
  0x43   : > { %400 = vmatpush1.bf16.msra.mxu0 %v887_v4  ;;  %v903_v15 = vld [vmem:[#allocation7 + $0x4] ss:$12 sps:$4 sm:$0xff]   ;;  %788 = vmatprep.mubr.msk.bf16.mxu1 %vm1064_vm0, %v1063_v19  ;;  %v908_v22 = vld [vmem:[#allocation7 + $0x80] ss:$12 sps:$4 sm:$0xff]   ;;  %v909_v23 = vld [vmem:[#allocation7 + $0x68] ss:$12 sps:$4 sm:$0xff]  }
  0x44   : > { %401 = vmatprep.subr.bf16.mxu0 %v888_v5  ;;  %v1216_v17 = vld [vmem:[%s1205_s26] sm:$0xff]  ;;  %v912_v26 = vld [vmem:[#allocation7 + $0x20] ss:$12 sps:$4 sm:$0xff]   ;;  %v260_v30 = vsub.s32 1, %v255_v29  ;;  %v256_v33 = vsub.s32 0, %v255_v29  ;;  %v264_v43 = vsub.s32 2, %v255_v29 }
  0x45   : > { %v219_v18 = vpack.c.bf16 %v1216_v17, %v1216_v17  ;;  %v906_v20 = vld [vmem:[#allocation7 + $0xb0] ss:$12 sps:$4 sm:$0xff]   ;;  %v907_v21 = vld [vmem:[#allocation7 + $0x98] ss:$12 sps:$4 sm:$0xff]   ;;  %v913_v27 = vld [vmem:[#allocation7 + $0x8] ss:$12 sps:$4 sm:$0xff]  }
  0x46   : > { %773 = vmatpush3.bf16.msra.mxu1 %v906_v20  ;;  %v910_v24 = vld [vmem:[#allocation7 + $0x50] ss:$12 sps:$4 sm:$0xff]   ;;  %v911_v25 = vld [vmem:[#allocation7 + $0x38] ss:$12 sps:$4 sm:$0xff]   ;;  %vm559_vm1 = vcmask 1043456   ;;  %s727_s24 = sshll.u32 %s1201_s8, 4 }
  0x47   : > { %402 = vmatpush1.bf16.msra.mxu0 %v890_v6  ;;  %774 = vmatprep.subr.bf16.mxu1 %v1063_v19  ;;  %v252_v31 = vld [vmem:[%s1290_s2] sm:$0x7]  ;;  %s1227_s27 = scalar_lea.vmem [#allocation9], %s727_s24  ;;  %vm534_vm2 = vcmask 64512   ;;  %s758_s30 = sshll.u32 %s1048_s15, 8 }
  0x48   : > { %403 = vmatprep.subr.bf16.mxu0 %v891_v7  ;;  %v261_v32 = vrot.slane %v252_v31, %v260_v30  ;;  %v257_v37 = vrot.slane %v252_v31, %v256_v33  ;;  %v265_v45 = vrot.slane %v252_v31, %v264_v43  ;;  %609 = vst [vmem:[%s1227_s27] sm:$0xff] %v1216_v17  ;;  %s627_s29 = sshll.u32 %s1227_s27, 4  ;;  %s1241_s5 = scalar_lea.hbm %s1291_s3, %s758_s30  ;;  %s1236_s29 = int_to_ptr.vmem [resolvable:$true] %s627_s29 }
  0x49   : > { %s613_s6 = scalar_lea.sflag [#allocation6], %s1201_s8  ;;  %s972_s7 = scalar_lea.vmem %s1236_s29, 256 }
  0x4a   : > { %775 = vmatpush3.bf16.msra.mxu1 %v907_v21  ;;  %p973_p1 = scmp.ne.s32.totalorder %s1236_s29, %s972_s7  ;;  %s1065_s15 = smov [#allocation9]  }
  0x4b   : > { %404 = vmatpush1.bf16.msra.mxu0 %v893_v8  ;;  %776 = vmatprep.subr.bf16.mxu1 %v1063_v19  ;;  %s976_s10 = sshll.u32 %s1065_s15, 4  ;;  %s977_s10 = int_to_ptr.vmem [resolvable:$false] %s976_s10 }
  0x4c   : > { %405 = vmatprep.subr.bf16.mxu0 %v894_v9  ;;  %p974_p8 = pnand %p973_p1, %p1173_p13  ;;  %s978_s25 = scalar_lea.vmem %s977_s10, 512 }
  0x4d   : > { %p979_p0 = scmp.lt.s32.totalorder %s1236_s29, %s977_s10  ;;  %p980_p2 = scmp.lt.s32.totalorder %s978_s25, %s972_s7 }
  0x4e   : > { %777 = vmatpush3.bf16.msra.mxu1 %v908_v22  ;;  %p975_p10 = pneg %p974_p8 }
  0x4f   : > { %406 = vmatpush1.bf16.msra.mxu0 %v896_v10  ;;  %778 = vmatprep.subr.bf16.mxu1 %v1063_v19  ;;  %p981_p3 = por %p980_p2, %p979_p0 }
  0x50   : > { %407 = vmatprep.subr.bf16.mxu0 %v897_v11 }
  0x51   : > { %p982_p5 = pnand %p981_p3, %p975_p10 }
  0x52   : > { %779 = vmatpush3.bf16.msra.mxu1 %v909_v23 }
  0x53   : > { %408 = vmatpush1.bf16.msra.mxu0 %v899_v12  ;;  %780 = vmatprep.subr.bf16.mxu1 %v1063_v19 }
  0x54   : > { %409 = vmatprep.subr.bf16.mxu0 %v900_v13 }
  0x56   : > { %781 = vmatpush3.bf16.msra.mxu1 %v910_v24 }
  0x57   : > { %410 = vmatpush1.bf16.msra.mxu0 %v902_v14  ;;  %782 = vmatprep.subr.bf16.mxu1 %v1063_v19 }
  0x58   : > { %411 = vmatprep.subr.bf16.mxu0 %v903_v15 }
  0x5a   : > { %783 = vmatpush3.bf16.msra.mxu1 %v911_v25 }
  0x5b   : > { %412 = vmatpush1.bf16.msra.mxu0 %v905_v16  ;;  %784 = vmatprep.subr.bf16.mxu1 %v1063_v19 }
  0x5c   : > { %792 = vmatprep.subr.bf16.mxu0 %v1063_v19 }
  0x5e   : > { %430 = vmatmul.mubr.bf16.vlgmr.msra.gmra.mxu0 %v219_v18  ;;  %785 = vmatpush3.bf16.msra.mxu1 %v912_v26 }
  0x5f   : > { %794 = vmatprep.mubr.msk.bf16.mxu0 %vm1064_vm0, %v1063_v19  ;;  %786 = vmatprep.subr.bf16.mxu1 %v1063_v19 }
  0x62   : > { %787 = vmatpush3.bf16.msra.mxu1 %v913_v27 }
  0x63   : > { %798 = vmatprep.subr.bf16.mxu1 %v1063_v19 }
  0x65   : > { %789 = vmatmul.mubr.bf16.vlgmr.msra.gmra.mxu1 %v219_v18 }
  0x66   : > { %800 = vmatprep.mubr.msk.bf16.mxu1 %vm1064_vm0, %v1063_v19 }
 0x11e   : > { %v431_v34 = vpop.f32.mrf.mxu0 }
 0x11f   : > { %v432_v41 = vadd.f32 %v431_v34, %v257_v37 }
 0x120   : > { %v433_v35 = vpop.f32.mrf.mxu0 }
 0x121   : > { %v434_v36 = vadd.f32 %v433_v35, %v261_v32  ;;  %v484_v42 = vpack.c.bf16 %v432_v41, %v432_v41 }
 0x122   : > { %v435_v38 = vpop.f32.mrf.mxu0 }
 0x123   : > { %v492_v39 = vpack.c.bf16 %v434_v36, %v434_v36 }
 0x124   : > { %v436_v40 = vpop.f32.mrf.mxu0 }
 0x125   : > { %793 = vmatpush3.bf16.xpose.msra.mxu0 %v492_v39  ;;  %v472_v44 = vpop.f32.mrf.mxu1 }
 0x126   : > { %v473_v47 = vadd.f32 %v472_v44, %v265_v45 }
 0x127   : > { %v790_v46 = vpop.f32.mrf.mxu1 }
 0x128   : > { %v493_v49 = vpack.c.bf16 %v473_v47, %v473_v47 }
 0x129   : > { %v475_v48 = vpop.f32.mrf.mxu1 }
 0x12a   : > { %v561_v51 = vsel %vm559_vm1, %v493_v49, 0 }
 0x12b   : > { %v791_v50 = vpop.f32.mrf.mxu1  ;;  %799 = vmatpush3.bf16.msra.mxu1 %v561_v51 }
 0x12c   : > { %795 = vmatmul.mubr.bf16.vlgmr.msra.gmra.mxu0 %v484_v42 }
 0x1ec   : > { %v528_v52 = vpop.f32.mrf.mxu0 }
 0x1ed   : > { %v535_v53 = vsel %vm534_vm2, %v528_v52, -inf }
 0x1ee   : > { %v536_v54 = vrot.slane %v535_v53, 4  ;;  %v796_v55 = vpop.f32.mrf.mxu0 }
 0x1f0   : > { %v537_v56 = vmax.f32 %v535_v53, %v536_v54  ;;  %v531_v57 = vpop.f32.mrf.mxu0 }
 0x1f2   : > { %v538_v58 = vrot.slane %v537_v56, 2  ;;  %v797_v59 = vpop.f32.mrf.mxu0 }
 0x1f4   : > { %v539_v60 = vmax.f32 %v537_v56, %v538_v58 }
 0x1f6   : > { %v540_v61 = vrot.slane %v539_v60, 1 }
 0x1f8   : > { %v541_v62 = vmax.f32 %v539_v60, %v540_v61 }
 0x1fa   : > { %v542_v63 = vsub.f32 %v528_v52, %v541_v62 }
 0x1fc   : > { %v543_v0 = vmul.f32 1.442695, %v542_v63 }
 0x1fe   : > { %914 = vpow2.f32 %v543_v0 }
 0x20b   : > { %v915_v1 = vpop.eup %914 }
 0x20c   : > { %v545_v2 = vsel %vm534_vm2, %v915_v1, 0.0 }
 0x20d   : > { %v546_v3 = vrot.slane %v545_v2, 4 }
 0x20f   : > { %v547_v4 = vadd.f32 %v546_v3, %v545_v2 }
 0x211   : > { %v548_v5 = vrot.slane %v547_v4, 2 }
 0x213   : > { %v549_v6 = vadd.f32 %v548_v5, %v547_v4 }
 0x215   : > { %v550_v7 = vrot.slane %v549_v6, 1 }
 0x217   : > { %v551_v8 = vadd.f32 %v550_v7, %v549_v6 }
 0x219   : > { %916 = vrcp.f32 %v551_v8 }
 0x226   : > { %v917_v9 = vpop.eup %916 }
 0x227   : > { %v553_v10 = vmul.f32 %v917_v9, %v915_v1 }
 0x229   : > { %v554_v11 = vpack.c.bf16 %v553_v10, %v553_v10 }
 0x22b   : > { %801 = vmatmul.mubr.msk.bf16.vlgmr.msra.gmra.mxu1 %vm534_vm2, %v554_v11 }
 0x2eb   : > { %v597_v12 = vpop.f32.mrf.mxu1 }
 0x2ec   : > { %611 = vst [vmem:[%s1227_s27 + $0x8] sm:$0xff] %v597_v12 }
 0x2ed   : > { %v802_v13 = vpop.f32.mrf.mxu1 }
 0x2ee   : > { %985 = shalt.err (!%p982_p5)
}
 0x2ef   : > { %s986_s11 = scalar_lea.hbm %s1241_s5, 256  ;;  %s990_s26 = scalar_lea.hbm %s1291_s3, 512 }
 0x2f0   : > { %p987_p7 = scmp.ne.s32.totalorder %s1241_s5, %s986_s11  ;;  %p991_p9 = scmp.lt.s32.totalorder %s1241_s5, %s1291_s3 }
 0x2f1   : > { %p992_p11 = scmp.lt.s32.totalorder %s990_s26, %s986_s11 }
 0x2f2   : > { %p988_p6 = pnand %p987_p7, %p1173_p13 }
 0x2f3   : > { %p993_p12 = por %p992_p11, %p991_p9 }
 0x2f4   : > { %p989_p4 = pneg %p988_p6 }
 0x2f6   : > { %p994_p1 = pnand %p993_p12, %p989_p4 }
 0x2f8   : > { %997 = shalt.err (!%p994_p1)
}
 0x2f9   : > { %810 = dma.vmem_to_hbm [thread:$0]  (%p1173_p13), %s1236_s29, 256, %s1241_s5, %s613_s6   ;;  %v600_v14 = vpop.f32.mrf.mxu1 }
 0x2fb   : > { %v803_v15 = vpop.f32.mrf.mxu1 }
 0x2fc PF: > { %s639_s24 = sand.u32 1, %s1036_s12   ;;  %p1303_p8 = scmp.ne.s32.totalorder %s1296_s23, 0 }
 0x2fd   : > { %p1304_p10 = scmp.ge.s32.totalorder %s1056_s17, 2  ;;  %s640_s27 = scalar_lea.sflag [#allocation6], %s639_s24 }
 0x2ff   : > { %p821_p0 = pnand %p1304_p10, %p1303_p8 }
 0x301   : > { %p822_p2 = pneg %p821_p0 }
 0x303   : > { %1031 = dma.done.wait (%p822_p2), %s640_s27, 256  }
 0x304   : > { %1033 = vsyncadd (%p822_p2), %s640_s27, 4294967040  ;;  %s20_s17 = sadd.s32 1, %s1056_s17   ;;  %s1305_s12 = smov %s1040_s13 }
 0x305   : > { %p17_p3 = scmp.ge.s32.totalorder %s20_s17, 4   ;;  %s1306_s13 = smov %s1044_s14 }
 0x306   : > { %s1307_s14 = smov %s1182_s19  ;;  %s1308_s15 = smov %s1052_s16 }
 0x307   : > { %s1309_s16 = smov %s1311_s28  ;;  %19 = sbr.rel (!%p17_p3) target bundleno = 7 (0x7), region = 90 }
 0x30c   :  { %645 = vsyncpa [#allocation5], 1 }
 0x30d   :  { %647 = vsyncpa [#allocation5 + $0x1], 1 }
 0x30e   :  { %648 = vsyncpa [#allocation8], 1 }
 0x30f   :  { %649 = vsyncpa [#allocation6], 1 }
 0x310   :  { %651 = vsyncpa [#allocation6 + $0x1], 1 }

</bundles_post_ra>
